<compile_context>
chip_gen: v7x
topology: tpu7x:2x2x1
jax: 0.10.0
libtpu: 0.0.40
codegen_flags: <defaults>
</compile_context>

<pallas_src>
import jax
import jax.numpy as jnp
from jax.experimental import pallas as pl
from jax.experimental.pallas import tpu as pltpu

LN_EPS = 1e-5  # PyTorch nn.LayerNorm default


def _round_up(n, m):
  return (n + m - 1) // m * m


def _default_tm():
  """Row-tile size by TPU generation: 128 on v5 (128-wide MXU, small scoped
  VMEM), 256 on v6e/v7x (256-wide MXU, headroom after single-buffering)."""
  try:
    kind = jax.devices()[0].device_kind.lower()
  except Exception:
    kind = ""
  return 128 if "v5" in kind else 256


def _vmem_capacity_bytes():
  try:
    return int(pltpu.get_tpu_info().vmem_capacity_bytes)
  except Exception:
    return 64 << 20  # conservative fallback: v7x physical VMEM per TC


def det_head_kernel(x_ref, w1_ref, w2c_ref, w2b_ref, wl_ref, vecs_ref, ob_ref,
                    o_ref):
  """Fused cls+bbox DetectionHead forward for one (tm, D) row tile.

  Layer 1 runs as one (tm,D)@(D,2D) matmul for both heads; per head:
  LayerNorm->ReLU, Linear->LayerNorm->ReLU; then both (bottleneck @ final)
  folds run as one (tm,2D)@(2D,out_pad) matmul into disjoint columns of a
  lane-dense 128-wide slab.  Dropout is identity (eval mode).
  """
  D = w2c_ref.shape[0]
  wdt = w1_ref.dtype
  x = x_ref[...].astype(wdt)  # hoisted: cast once per tile

  # ---- layer 1, both heads in one MXU sequence -------------------------
  h1 = jnp.dot(x, w1_ref[...], preferred_element_type=jnp.float32)

  vecs = vecs_ref[...]  # (16, D) f32: packed biases / gammas / betas
  b1c, b1b = vecs[0:1], vecs[1:2]
  g1c, g1b = vecs[2:3], vecs[3:4]
  e1c, e1b = vecs[4:5], vecs[5:6]
  b2c, b2b = vecs[6:7], vecs[7:8]
  g2c, g2b = vecs[8:9], vecs[9:10]
  e2c, e2b = vecs[10:11], vecs[11:12]

  def ln_relu(h, gamma, beta):
    # One pass for both moments; fold gamma*rstd into a single scale and do a
    # single h*scale+shift sweep fused with the ReLU max.
    mu = jnp.mean(h, axis=-1, keepdims=True)
    ms = jnp.mean(h * h, axis=-1, keepdims=True)
    rstd = jax.lax.rsqrt(jnp.maximum(ms - mu * mu, 0.0) + LN_EPS)  # EUP slot
    scale = rstd * gamma
    return jnp.maximum(h * scale + (beta - mu * scale), 0.0)

  hc = ln_relu(h1[:, :D] + b1c, g1c, e1c)
  hb = ln_relu(h1[:, D:] + b1b, g1b, e1b)

  # ---- layer 2 (per head) ----------------------------------------------
  hc = ln_relu(
      jnp.dot(hc.astype(wdt), w2c_ref[...],
              preferred_element_type=jnp.float32) + b2c, g2c, e2c)
  hb = ln_relu(
      jnp.dot(hb.astype(wdt), w2b_ref[...],
              preferred_element_type=jnp.float32) + b2b, g2b, e2b)

  # ---- folded (bottleneck @ final) projection, both heads in one matmul --
  h_cat = jnp.concatenate([hc.astype(wdt), hb.astype(wdt)], axis=-1)
  o = jnp.dot(h_cat, wl_ref[...], preferred_element_type=jnp.float32)
  o_ref[...] = (o + ob_ref[...]).astype(o_ref.dtype)


def run_detection_head(x2d, kernel_params, out_pad, *, tm=None,
                       vmem_limit_bytes=None):
  """x2d: (N, D); kernel_params: (w1_cat, w2_c, w2_b, wl_cat, vecs, bias_out).

  Returns the lane-dense (N, out_pad) output slab.
  """
  N, D = x2d.shape
  if tm is None:
    tm = _default_tm()

  # Pad rows only to the f32 sublane granule (8); ragged last grid step is
  # masked by Pallas (grid = cdiv), so no near-empty extra tiles.
  n_pad = _round_up(N, 8)
  if n_pad != N:
    x2d = jnp.pad(x2d, ((0, n_pad - N), (0, 0)))

  tm_eff = min(tm, n_pad)
  grid = pl.cdiv(n_pad, tm_eff)
  # Guarantee grid >= 2 when possible so both v7x TensorCores get work
  # (harmless ~0.35us extra step elsewhere).
  if grid == 1 and n_pad >= 16:
    tm_eff = _round_up(pl.cdiv(n_pad, 2), 8)
    grid = pl.cdiv(n_pad, tm_eff)

  # VMEM budget: single-buffered resident parameters + double-buffered
  # activation/output tiles.  Raise the scoped limit only when needed, capped
  # at 0.75x of the physical per-core VMEM (generation-aware).
  if vmem_limit_bytes is None:
    param_bytes = sum(int(p.size) * p.dtype.itemsize for p in kernel_params)
    tile_bytes = 2 * tm_eff * (D + out_pad) * x2d.dtype.itemsize
    needed = param_bytes + tile_bytes + (2 << 20)
    if needed > (16 << 20):
      cap = int(0.75 * _vmem_capacity_bytes())
      vmem_limit_bytes = int(min(needed, cap))

  def const_spec(p):
    # Whole parameter resident; block index never changes -> single buffer.
    return pl.BlockSpec(p.shape, lambda i: (0, 0),
                        pipeline_mode=pl.Buffered(1))

  in_specs = [pl.BlockSpec((tm_eff, D), lambda i: (i, 0))]
  in_specs += [const_spec(p) for p in kernel_params]

  out = pl.pallas_call(
      det_head_kernel,
      out_shape=jax.ShapeDtypeStruct((n_pad, out_pad), x2d.dtype),
      grid_spec=pltpu.PrefetchScalarGridSpec(
          num_scalar_prefetch=0,
          grid=(grid,),
          in_specs=in_specs,
          out_specs=pl.BlockSpec((tm_eff, out_pad), lambda i: (i, 0)),
      ),
      compiler_params=pltpu.CompilerParams(
          dimension_semantics=("parallel",),
          vmem_limit_bytes=vmem_limit_bytes),
  )(x2d, *kernel_params)
  return out[:N]


# ----------------------------------------------------------------------------
# Parameter construction (deterministic, mimics PyTorch nn.Linear init ranges)
# ----------------------------------------------------------------------------
def _linear_params(key, fan_in, fan_out):
  kw, kb = jax.random.split(key)
  bound = 1.0 / jnp.sqrt(fan_in)
  w = jax.random.uniform(kw, (fan_in, fan_out), jnp.float32, -bound, bound)
  b = jax.random.uniform(kb, (1, fan_out), jnp.float32, -bound, bound)
  return w, b


def make_mlp_params(key, input_dim, output_dim):
  hidden = input_dim      # hidden_dim = input_dim
  bottleneck = input_dim  # bottleneck_dim = input_dim
  k1, k2, k3, k4 = jax.random.split(key, 4)
  w1, b1 = _linear_params(k1, input_dim, hidden)
  g1 = jnp.ones((1, hidden), jnp.float32)
  be1 = jnp.zeros((1, hidden), jnp.float32)
  w2, b2 = _linear_params(k2, hidden, hidden)
  g2 = jnp.ones((1, hidden), jnp.float32)
  be2 = jnp.zeros((1, hidden), jnp.float32)
  w3, b3 = _linear_params(k3, hidden, bottleneck)
  wl, bl = _linear_params(k4, bottleneck, output_dim)
  return (w1, b1, g1, be1, w2, b2, g2, be2, w3, b3, wl, bl)


def _layer_norm_ref(h, gamma, beta):
  mu = jnp.mean(h, axis=-1, keepdims=True)
  var = jnp.mean((h - mu) ** 2, axis=-1, keepdims=True)
  return (h - mu) * jax.lax.rsqrt(var + LN_EPS) * gamma + beta


def mlp_reference(x2d, params):
  """Pure-JAX reference of the original (unfused) per-head math."""
  (w1, b1, g1, be1, w2, b2, g2, be2, w3, b3, wl, bl) = params
  h = x2d @ w1 + b1
  h = jnp.maximum(_layer_norm_ref(h, g1, be1), 0.0)
  h = h @ w2 + b2
  h = jnp.maximum(_layer_norm_ref(h, g2, be2), 0.0)
  h = h @ w3 + b3
  return h @ wl + bl


class DetectionHeadPallas:
  """cls_logits, bbox_logits = head(x) with x of shape (B, Q, input_dim).

  NOTE: feature dims that are multiples of 128 fully use TPU lanes; tiny D
  (like the D=32 demo below) under-utilizes lanes and is only meant to check
  correctness at small scale.
  """

  def __init__(self, *, input_dim, num_classes, key,
               param_dtype=jnp.float32, tm=None):
    # param_dtype=jnp.bfloat16 halves weight VMEM / DMA and doubles MXU rate
    # on every generation (accumulation and LayerNorm math stay f32).
    self.input_dim = input_dim
    self.num_classes = num_classes + 1  # +1 background class
    self.param_dtype = param_dtype
    self.tm = tm if tm is not None else _default_tm()
    kc, kb = jax.random.split(key)
    self.cls_params = make_mlp_params(kc, input_dim, self.num_classes)
    self.bbox_params = make_mlp_params(kb, input_dim, 4)
    # Lane-dense output slab: cls cols [0, ncls), bbox cols [ncls, ncls+4),
    # zero padding up to a multiple of 128 lanes -> full-width unmasked store.
    self.out_pad = _round_up(self.num_classes + 4, 128)
    self._kernel_params = self._prepare_kernel_params()

  def _prepare_kernel_params(self):
    D = self.input_dim
    hi = jax.lax.Precision.HIGHEST

    def fold(params, col_off, out_dim):
      (w1, b1, g1, be1, w2, b2, g2, be2, w3, b3, wl, bl) = params
      # Bottleneck Linear and final projection compose exactly (no norm /
      # activation between them): fold into one (D, out_dim) matmul in f32.
      wl_f = jnp.dot(w3, wl, precision=hi)
      bl_f = jnp.dot(b3, wl, precision=hi) + bl
      wl_pad = jnp.zeros((D, self.out_pad), jnp.float32)
      wl_pad = wl_pad.at[:, col_off:col_off + out_dim].set(wl_f)
      bl_pad = jnp.zeros((1, self.out_pad), jnp.float32)
      bl_pad = bl_pad.at[:, col_off:col_off + out_dim].set(bl_f)
      return wl_pad, bl_pad

    (cw1, cb1, cg1, cbe1, cw2, cb2, cg2, cbe2, *_) = self.cls_params
    (bw1, bb1, bg1, bbe1, bw2, bb2, bg2, bbe2, *_) = self.bbox_params
    cwl_pad, cbl_pad = fold(self.cls_params, 0, self.num_classes)
    bwl_pad, bbl_pad = fold(self.bbox_params, self.num_classes, 4)

    dt = self.param_dtype
    # Layer-1 weights of both heads concatenated -> one (D, 2D) matmul.
    w1_cat = jnp.concatenate([cw1, bw1], axis=1).astype(dt)
    # Folded final projections stacked -> one (2D, out_pad) matmul.
    wl_cat = jnp.concatenate([cwl_pad, bwl_pad], axis=0).astype(dt)
    w2_c = cw2.astype(dt)
    w2_b = bw2.astype(dt)

    # Pack the twelve (1, D) bias/gamma/beta vectors into one (16, D) slab
    # (f32): one BlockSpec / DMA instead of twelve.
    vecs = jnp.zeros((16, D), jnp.float32)
    rows = [cb1, bb1, cg1, bg1, cbe1, bbe1, cb2, bb2, cg2, bg2, cbe2, bbe2]
    for r, v in enumerate(rows):
      vecs = vecs.at[r:r + 1, :].set(v)

    bias_out = cbl_pad + bbl_pad  # disjoint columns -> safe to add

    # TODO(synk): optional int8 (v5e/v6e) / fp8 (v7x) weight path for the DxD
    # matmuls with per-output-channel scales is not implemented.
    return (w1_cat, w2_c, w2_b, wl_cat, vecs, bias_out)

  def __call__(self, x):
    B, Q, D = x.shape
    x2d = x.reshape(B * Q, D)
    out = run_detection_head(x2d, self._kernel_params, self.out_pad,
                             tm=self.tm)
    ncls = self.num_classes
    cls_logits = out[:, :ncls].reshape(B, Q, ncls)
    bbox_logits = out[:, ncls:ncls + 4].reshape(B, Q, 4)
    return cls_logits, bbox_logits


if __name__ == "__main__":
  key = jax.random.PRNGKey(0)
  k_x, k_p, k_x2 = jax.random.split(key, 3)

  B, Q, D = 2, 8, 32          # batch=2, queries=8, feature dim=32
  num_classes = 5             # -> cls output dim = 6
  x = jax.random.normal(k_x, (B, Q, D), jnp.float32)

  head = DetectionHeadPallas(input_dim=D, num_classes=num_classes, key=k_p)
  cls_logits, bbox_logits = head(x)
  jax.block_until_ready((cls_logits, bbox_logits))

  # Verify against a pure-JAX reference of the original per-head math.
  x2d = x.reshape(B * Q, D)
  cls_ref = mlp_reference(x2d, head.cls_params).reshape(B, Q, num_classes + 1)
  bbox_ref = mlp_reference(x2d, head.bbox_params).reshape(B, Q, 4)
  assert cls_logits.shape == (B, Q, num_classes + 1)
  assert bbox_logits.shape == (B, Q, 4)
  assert jnp.allclose(cls_logits, cls_ref, atol=1e-4, rtol=1e-4)
  assert jnp.allclose(bbox_logits, bbox_ref, atol=1e-4, rtol=1e-4)

  # Ragged row count (N = 15, not a multiple of 8): padded to 8 granule only.
  B2, Q2 = 3, 5
  x_r = jax.random.normal(k_x2, (B2, Q2, D), jnp.float32)
  cls_r, bbox_r = head(x_r)
  jax.block_until_ready((cls_r, bbox_r))
  x_r2d = x_r.reshape(B2 * Q2, D)
  cls_r_ref = mlp_reference(x_r2d, head.cls_params).reshape(B2, Q2,
                                                            num_classes + 1)
  bbox_r_ref = mlp_reference(x_r2d, head.bbox_params).reshape(B2, Q2, 4)
  assert jnp.allclose(cls_r, cls_r_ref, atol=1e-4, rtol=1e-4)
  assert jnp.allclose(bbox_r, bbox_r_ref, atol=1e-4, rtol=1e-4)

  # bf16-weight variant (MXU fast path); f32 accumulation, f32 LayerNorm.
  head_bf16 = DetectionHeadPallas(input_dim=D, num_classes=num_classes,
                                  key=k_p, param_dtype=jnp.bfloat16)
  cls_h, bbox_h = head_bf16(x)
  jax.block_until_ready((cls_h, bbox_h))
  assert jnp.allclose(cls_h, cls_ref, atol=5e-2, rtol=5e-2)
  assert jnp.allclose(bbox_h, bbox_ref, atol=5e-2, rtol=5e-2)

  # TODO(synk): dropout is implemented as identity (eval mode); training-mode
  # stochastic dropout would need pltpu.prng_seed / prng_random_bits.
  print("KERNEL_OK")
</pallas_src>

<mosaic_0001>
module attributes {stable_mosaic.version = 11 : i64} {
  func.func @det_head_kernel(%arg0: i32, %arg1: memref<8x32xf32, #tpu.memory_space<vmem>>, %arg2: memref<32x64xf32, #tpu.memory_space<vmem>>, %arg3: memref<32x32xf32, #tpu.memory_space<vmem>>, %arg4: memref<32x32xf32, #tpu.memory_space<vmem>>, %arg5: memref<64x128xf32, #tpu.memory_space<vmem>>, %arg6: memref<16x32xf32, #tpu.memory_space<vmem>>, %arg7: memref<1x128xf32, #tpu.memory_space<vmem>>, %arg8: memref<8x128xf32, #tpu.memory_space<vmem>>) attributes {dimension_semantics = [#tpu.dimension_semantics<parallel>], iteration_bounds = array<i64: 2>, scalar_prefetch = 0 : i64, scratch_operands = 0 : i64, tpu.core_type = #tpu.core_type<tc>, window_params = [{transform_indices = @transform_0, window_bounds = array<i64: 8, 32>}, {pipeline_mode = #tpu.pipeline_mode<synchronous>, transform_indices = @transform_1, window_bounds = array<i64: 32, 64>}, {pipeline_mode = #tpu.pipeline_mode<synchronous>, transform_indices = @transform_2, window_bounds = array<i64: 32, 32>}, {pipeline_mode = #tpu.pipeline_mode<synchronous>, transform_indices = @transform_3, window_bounds = array<i64: 32, 32>}, {pipeline_mode = #tpu.pipeline_mode<synchronous>, transform_indices = @transform_4, window_bounds = array<i64: 64, 128>}, {pipeline_mode = #tpu.pipeline_mode<synchronous>, transform_indices = @transform_5, window_bounds = array<i64: 16, 32>}, {pipeline_mode = #tpu.pipeline_mode<synchronous>, transform_indices = @transform_6, window_bounds = array<i64: 1, 128>}, {transform_indices = @transform_7, window_bounds = array<i64: 8, 128>}]} {
    %c0 = arith.constant 0 : index
    %c0_0 = arith.constant 0 : index
    %0 = vector.load %arg1[%c0, %c0_0] : memref<8x32xf32, #tpu.memory_space<vmem>>, vector<8x32xf32>
    %c0_1 = arith.constant 0 : index
    %c0_2 = arith.constant 0 : index
    %1 = vector.load %arg2[%c0_1, %c0_2] : memref<32x64xf32, #tpu.memory_space<vmem>>, vector<32x64xf32>
    %cst = arith.constant dense<0.000000e+00> : vector<8x64xf32>
    %2 = tpu.matmul %0, %1, %cst {dimension_numbers = #tpu.dot_dimension_numbers<[1], [0], [0], [1], [0, 0, 1, 1], [], []>} : vector<8x32xf32>, vector<32x64xf32>, vector<8x64xf32> -> vector<8x64xf32>
    %c0_3 = arith.constant 0 : index
    %c0_4 = arith.constant 0 : index
    %3 = vector.load %arg6[%c0_3, %c0_4] : memref<16x32xf32, #tpu.memory_space<vmem>>, vector<16x32xf32>
    %4 = vector.extract_strided_slice %3 {offsets = [0, 0], sizes = [1, 32], strides = [1, 1]} : vector<16x32xf32> to vector<1x32xf32>
    %5 = vector.extract_strided_slice %3 {offsets = [1, 0], sizes = [1, 32], strides = [1, 1]} : vector<16x32xf32> to vector<1x32xf32>
    %6 = vector.extract_strided_slice %3 {offsets = [2, 0], sizes = [1, 32], strides = [1, 1]} : vector<16x32xf32> to vector<1x32xf32>
    %7 = vector.extract_strided_slice %3 {offsets = [3, 0], sizes = [1, 32], strides = [1, 1]} : vector<16x32xf32> to vector<1x32xf32>
    %8 = vector.extract_strided_slice %3 {offsets = [4, 0], sizes = [1, 32], strides = [1, 1]} : vector<16x32xf32> to vector<1x32xf32>
    %9 = vector.extract_strided_slice %3 {offsets = [5, 0], sizes = [1, 32], strides = [1, 1]} : vector<16x32xf32> to vector<1x32xf32>
    %10 = vector.extract_strided_slice %3 {offsets = [6, 0], sizes = [1, 32], strides = [1, 1]} : vector<16x32xf32> to vector<1x32xf32>
    %11 = vector.extract_strided_slice %3 {offsets = [7, 0], sizes = [1, 32], strides = [1, 1]} : vector<16x32xf32> to vector<1x32xf32>
    %12 = vector.extract_strided_slice %3 {offsets = [8, 0], sizes = [1, 32], strides = [1, 1]} : vector<16x32xf32> to vector<1x32xf32>
    %13 = vector.extract_strided_slice %3 {offsets = [9, 0], sizes = [1, 32], strides = [1, 1]} : vector<16x32xf32> to vector<1x32xf32>
    %14 = vector.extract_strided_slice %3 {offsets = [10, 0], sizes = [1, 32], strides = [1, 1]} : vector<16x32xf32> to vector<1x32xf32>
    %15 = vector.extract_strided_slice %3 {offsets = [11, 0], sizes = [1, 32], strides = [1, 1]} : vector<16x32xf32> to vector<1x32xf32>
    %16 = vector.extract_strided_slice %2 {offsets = [0, 0], sizes = [8, 32], strides = [1, 1]} : vector<8x64xf32> to vector<8x32xf32>
    %17 = vector.broadcast %4 : vector<1x32xf32> to vector<8x32xf32>
    %18 = arith.addf %16, %17 : vector<8x32xf32>
    %cst_5 = arith.constant dense<0.000000e+00> : vector<8xf32>
    %19 = vector.multi_reduction <add>, %18, %cst_5 [1] : vector<8x32xf32> to vector<8xf32>
    %20 = vector.shape_cast %19 : vector<8xf32> to vector<8x1xf32>
    %cst_6 = arith.constant 3.200000e+01 : f32
    %21 = vector.broadcast %cst_6 : f32 to vector<8x1xf32>
    %22 = arith.divf %20, %21 : vector<8x1xf32>
    %23 = arith.mulf %18, %18 : vector<8x32xf32>
    %cst_7 = arith.constant dense<0.000000e+00> : vector<8xf32>
    %24 = vector.multi_reduction <add>, %23, %cst_7 [1] : vector<8x32xf32> to vector<8xf32>
    %25 = vector.shape_cast %24 : vector<8xf32> to vector<8x1xf32>
    %cst_8 = arith.constant 3.200000e+01 : f32
    %26 = vector.broadcast %cst_8 : f32 to vector<8x1xf32>
    %27 = arith.divf %25, %26 : vector<8x1xf32>
    %28 = arith.mulf %22, %22 : vector<8x1xf32>
    %29 = arith.subf %27, %28 : vector<8x1xf32>
    %cst_9 = arith.constant 0.000000e+00 : f32
    %30 = vector.broadcast %cst_9 : f32 to vector<8x1xf32>
    %31 = arith.maximumf %29, %30 : vector<8x1xf32>
    %cst_10 = arith.constant 9.99999974E-6 : f32
    %32 = vector.broadcast %cst_10 : f32 to vector<8x1xf32>
    %33 = arith.addf %31, %32 : vector<8x1xf32>
    %34 = math.rsqrt %33 : vector<8x1xf32>
    %35 = vector.broadcast %34 : vector<8x1xf32> to vector<8x32xf32>
    %36 = vector.broadcast %6 : vector<1x32xf32> to vector<8x32xf32>
    %37 = arith.mulf %35, %36 : vector<8x32xf32>
    %38 = arith.mulf %18, %37 : vector<8x32xf32>
    %39 = vector.broadcast %22 : vector<8x1xf32> to vector<8x32xf32>
    %40 = arith.mulf %39, %37 : vector<8x32xf32>
    %41 = vector.broadcast %8 : vector<1x32xf32> to vector<8x32xf32>
    %42 = arith.subf %41, %40 : vector<8x32xf32>
    %43 = arith.addf %38, %42 : vector<8x32xf32>
    %cst_11 = arith.constant 0.000000e+00 : f32
    %44 = vector.broadcast %cst_11 : f32 to vector<8x32xf32>
    %45 = arith.maximumf %43, %44 : vector<8x32xf32>
    %46 = vector.extract_strided_slice %2 {offsets = [0, 32], sizes = [8, 32], strides = [1, 1]} : vector<8x64xf32> to vector<8x32xf32>
    %47 = vector.broadcast %5 : vector<1x32xf32> to vector<8x32xf32>
    %48 = arith.addf %46, %47 : vector<8x32xf32>
    %cst_12 = arith.constant dense<0.000000e+00> : vector<8xf32>
    %49 = vector.multi_reduction <add>, %48, %cst_12 [1] : vector<8x32xf32> to vector<8xf32>
    %50 = vector.shape_cast %49 : vector<8xf32> to vector<8x1xf32>
    %cst_13 = arith.constant 3.200000e+01 : f32
    %51 = vector.broadcast %cst_13 : f32 to vector<8x1xf32>
    %52 = arith.divf %50, %51 : vector<8x1xf32>
    %53 = arith.mulf %48, %48 : vector<8x32xf32>
    %cst_14 = arith.constant dense<0.000000e+00> : vector<8xf32>
    %54 = vector.multi_reduction <add>, %53, %cst_14 [1] : vector<8x32xf32> to vector<8xf32>
    %55 = vector.shape_cast %54 : vector<8xf32> to vector<8x1xf32>
    %cst_15 = arith.constant 3.200000e+01 : f32
    %56 = vector.broadcast %cst_15 : f32 to vector<8x1xf32>
    %57 = arith.divf %55, %56 : vector<8x1xf32>
    %58 = arith.mulf %52, %52 : vector<8x1xf32>
    %59 = arith.subf %57, %58 : vector<8x1xf32>
    %cst_16 = arith.constant 0.000000e+00 : f32
    %60 = vector.broadcast %cst_16 : f32 to vector<8x1xf32>
    %61 = arith.maximumf %59, %60 : vector<8x1xf32>
    %cst_17 = arith.constant 9.99999974E-6 : f32
    %62 = vector.broadcast %cst_17 : f32 to vector<8x1xf32>
    %63 = arith.addf %61, %62 : vector<8x1xf32>
    %64 = math.rsqrt %63 : vector<8x1xf32>
    %65 = vector.broadcast %64 : vector<8x1xf32> to vector<8x32xf32>
    %66 = vector.broadcast %7 : vector<1x32xf32> to vector<8x32xf32>
    %67 = arith.mulf %65, %66 : vector<8x32xf32>
    %68 = arith.mulf %48, %67 : vector<8x32xf32>
    %69 = vector.broadcast %52 : vector<8x1xf32> to vector<8x32xf32>
    %70 = arith.mulf %69, %67 : vector<8x32xf32>
    %71 = vector.broadcast %9 : vector<1x32xf32> to vector<8x32xf32>
    %72 = arith.subf %71, %70 : vector<8x32xf32>
    %73 = arith.addf %68, %72 : vector<8x32xf32>
    %cst_18 = arith.constant 0.000000e+00 : f32
    %74 = vector.broadcast %cst_18 : f32 to vector<8x32xf32>
    %75 = arith.maximumf %73, %74 : vector<8x32xf32>
    %c0_19 = arith.constant 0 : index
    %c0_20 = arith.constant 0 : index
    %76 = vector.load %arg3[%c0_19, %c0_20] : memref<32x32xf32, #tpu.memory_space<vmem>>, vector<32x32xf32>
    %cst_21 = arith.constant dense<0.000000e+00> : vector<8x32xf32>
    %77 = tpu.matmul %45, %76, %cst_21 {dimension_numbers = #tpu.dot_dimension_numbers<[1], [0], [0], [1], [0, 0, 1, 1], [], []>} : vector<8x32xf32>, vector<32x32xf32>, vector<8x32xf32> -> vector<8x32xf32>
    %78 = vector.broadcast %10 : vector<1x32xf32> to vector<8x32xf32>
    %79 = arith.addf %77, %78 : vector<8x32xf32>
    %cst_22 = arith.constant dense<0.000000e+00> : vector<8xf32>
    %80 = vector.multi_reduction <add>, %79, %cst_22 [1] : vector<8x32xf32> to vector<8xf32>
    %81 = vector.shape_cast %80 : vector<8xf32> to vector<8x1xf32>
    %cst_23 = arith.constant 3.200000e+01 : f32
    %82 = vector.broadcast %cst_23 : f32 to vector<8x1xf32>
    %83 = arith.divf %81, %82 : vector<8x1xf32>
    %84 = arith.mulf %79, %79 : vector<8x32xf32>
    %cst_24 = arith.constant dense<0.000000e+00> : vector<8xf32>
    %85 = vector.multi_reduction <add>, %84, %cst_24 [1] : vector<8x32xf32> to vector<8xf32>
    %86 = vector.shape_cast %85 : vector<8xf32> to vector<8x1xf32>
    %cst_25 = arith.constant 3.200000e+01 : f32
    %87 = vector.broadcast %cst_25 : f32 to vector<8x1xf32>
    %88 = arith.divf %86, %87 : vector<8x1xf32>
    %89 = arith.mulf %83, %83 : vector<8x1xf32>
    %90 = arith.subf %88, %89 : vector<8x1xf32>
    %cst_26 = arith.constant 0.000000e+00 : f32
    %91 = vector.broadcast %cst_26 : f32 to vector<8x1xf32>
    %92 = arith.maximumf %90, %91 : vector<8x1xf32>
    %cst_27 = arith.constant 9.99999974E-6 : f32
    %93 = vector.broadcast %cst_27 : f32 to vector<8x1xf32>
    %94 = arith.addf %92, %93 : vector<8x1xf32>
    %95 = math.rsqrt %94 : vector<8x1xf32>
    %96 = vector.broadcast %95 : vector<8x1xf32> to vector<8x32xf32>
    %97 = vector.broadcast %12 : vector<1x32xf32> to vector<8x32xf32>
    %98 = arith.mulf %96, %97 : vector<8x32xf32>
    %99 = arith.mulf %79, %98 : vector<8x32xf32>
    %100 = vector.broadcast %83 : vector<8x1xf32> to vector<8x32xf32>
    %101 = arith.mulf %100, %98 : vector<8x32xf32>
    %102 = vector.broadcast %14 : vector<1x32xf32> to vector<8x32xf32>
    %103 = arith.subf %102, %101 : vector<8x32xf32>
    %104 = arith.addf %99, %103 : vector<8x32xf32>
    %cst_28 = arith.constant 0.000000e+00 : f32
    %105 = vector.broadcast %cst_28 : f32 to vector<8x32xf32>
    %106 = arith.maximumf %104, %105 : vector<8x32xf32>
    %c0_29 = arith.constant 0 : index
    %c0_30 = arith.constant 0 : index
    %107 = vector.load %arg4[%c0_29, %c0_30] : memref<32x32xf32, #tpu.memory_space<vmem>>, vector<32x32xf32>
    %cst_31 = arith.constant dense<0.000000e+00> : vector<8x32xf32>
    %108 = tpu.matmul %75, %107, %cst_31 {dimension_numbers = #tpu.dot_dimension_numbers<[1], [0], [0], [1], [0, 0, 1, 1], [], []>} : vector<8x32xf32>, vector<32x32xf32>, vector<8x32xf32> -> vector<8x32xf32>
    %109 = vector.broadcast %11 : vector<1x32xf32> to vector<8x32xf32>
    %110 = arith.addf %108, %109 : vector<8x32xf32>
    %cst_32 = arith.constant dense<0.000000e+00> : vector<8xf32>
    %111 = vector.multi_reduction <add>, %110, %cst_32 [1] : vector<8x32xf32> to vector<8xf32>
    %112 = vector.shape_cast %111 : vector<8xf32> to vector<8x1xf32>
    %cst_33 = arith.constant 3.200000e+01 : f32
    %113 = vector.broadcast %cst_33 : f32 to vector<8x1xf32>
    %114 = arith.divf %112, %113 : vector<8x1xf32>
    %115 = arith.mulf %110, %110 : vector<8x32xf32>
    %cst_34 = arith.constant dense<0.000000e+00> : vector<8xf32>
    %116 = vector.multi_reduction <add>, %115, %cst_34 [1] : vector<8x32xf32> to vector<8xf32>
    %117 = vector.shape_cast %116 : vector<8xf32> to vector<8x1xf32>
    %cst_35 = arith.constant 3.200000e+01 : f32
    %118 = vector.broadcast %cst_35 : f32 to vector<8x1xf32>
    %119 = arith.divf %117, %118 : vector<8x1xf32>
    %120 = arith.mulf %114, %114 : vector<8x1xf32>
    %121 = arith.subf %119, %120 : vector<8x1xf32>
    %cst_36 = arith.constant 0.000000e+00 : f32
    %122 = vector.broadcast %cst_36 : f32 to vector<8x1xf32>
    %123 = arith.maximumf %121, %122 : vector<8x1xf32>
    %cst_37 = arith.constant 9.99999974E-6 : f32
    %124 = vector.broadcast %cst_37 : f32 to vector<8x1xf32>
    %125 = arith.addf %123, %124 : vector<8x1xf32>
    %126 = math.rsqrt %125 : vector<8x1xf32>
    %127 = vector.broadcast %126 : vector<8x1xf32> to vector<8x32xf32>
    %128 = vector.broadcast %13 : vector<1x32xf32> to vector<8x32xf32>
    %129 = arith.mulf %127, %128 : vector<8x32xf32>
    %130 = arith.mulf %110, %129 : vector<8x32xf32>
    %131 = vector.broadcast %114 : vector<8x1xf32> to vector<8x32xf32>
    %132 = arith.mulf %131, %129 : vector<8x32xf32>
    %133 = vector.broadcast %15 : vector<1x32xf32> to vector<8x32xf32>
    %134 = arith.subf %133, %132 : vector<8x32xf32>
    %135 = arith.addf %130, %134 : vector<8x32xf32>
    %cst_38 = arith.constant 0.000000e+00 : f32
    %136 = vector.broadcast %cst_38 : f32 to vector<8x32xf32>
    %137 = arith.maximumf %135, %136 : vector<8x32xf32>
    %138 = tpu.concatenate %106, %137 in 1 : vector<8x32xf32>, vector<8x32xf32> -> vector<8x64xf32>
    %c0_39 = arith.constant 0 : index
    %c0_40 = arith.constant 0 : index
    %139 = vector.load %arg5[%c0_39, %c0_40] : memref<64x128xf32, #tpu.memory_space<vmem>>, vector<64x128xf32>
    %cst_41 = arith.constant dense<0.000000e+00> : vector<8x128xf32>
    %140 = tpu.matmul %138, %139, %cst_41 {dimension_numbers = #tpu.dot_dimension_numbers<[1], [0], [0], [1], [0, 0, 1, 1], [], []>} : vector<8x64xf32>, vector<64x128xf32>, vector<8x128xf32> -> vector<8x128xf32>
    %c0_42 = arith.constant 0 : index
    %c0_43 = arith.constant 0 : index
    %141 = vector.load %arg7[%c0_42, %c0_43] : memref<1x128xf32, #tpu.memory_space<vmem>>, vector<1x128xf32>
    %142 = vector.broadcast %141 : vector<1x128xf32> to vector<8x128xf32>
    %143 = arith.addf %140, %142 : vector<8x128xf32>
    %c0_44 = arith.constant 0 : index
    %c0_45 = arith.constant 0 : index
    %144 = vector.load %arg8[%c0_44, %c0_45] : memref<8x128xf32, #tpu.memory_space<vmem>>, vector<8x128xf32>
    tpu.vector_store %arg8[%c0_44, %c0_45], %143 {strides = array<i32>} : memref<8x128xf32, #tpu.memory_space<vmem>>, vector<8x128xf32>,
    return
  }
  func.func @transform_0(%arg0: i32) -> (i32, i32) {
    %c0_i32 = arith.constant 0 : i32
    %c0_i32_0 = arith.constant 0 : i32
    return %arg0, %c0_i32 : i32, i32
  }
  func.func @transform_1(%arg0: i32) -> (i32, i32) {
    %c0_i32 = arith.constant 0 : i32
    %c0_i32_0 = arith.constant 0 : i32
    %c0_i32_1 = arith.constant 0 : i32
    return %c0_i32, %c0_i32_0 : i32, i32
  }
  func.func @transform_2(%arg0: i32) -> (i32, i32) {
    %c0_i32 = arith.constant 0 : i32
    %c0_i32_0 = arith.constant 0 : i32
    %c0_i32_1 = arith.constant 0 : i32
    return %c0_i32, %c0_i32_0 : i32, i32
  }
  func.func @transform_3(%arg0: i32) -> (i32, i32) {
    %c0_i32 = arith.constant 0 : i32
    %c0_i32_0 = arith.constant 0 : i32
    %c0_i32_1 = arith.constant 0 : i32
    return %c0_i32, %c0_i32_0 : i32, i32
  }
  func.func @transform_4(%arg0: i32) -> (i32, i32) {
    %c0_i32 = arith.constant 0 : i32
    %c0_i32_0 = arith.constant 0 : i32
    %c0_i32_1 = arith.constant 0 : i32
    return %c0_i32, %c0_i32_0 : i32, i32
  }
  func.func @transform_5(%arg0: i32) -> (i32, i32) {
    %c0_i32 = arith.constant 0 : i32
    %c0_i32_0 = arith.constant 0 : i32
    %c0_i32_1 = arith.constant 0 : i32
    return %c0_i32, %c0_i32_0 : i32, i32
  }
  func.func @transform_6(%arg0: i32) -> (i32, i32) {
    %c0_i32 = arith.constant 0 : i32
    %c0_i32_0 = arith.constant 0 : i32
    %c0_i32_1 = arith.constant 0 : i32
    return %c0_i32, %c0_i32_0 : i32, i32
  }
  func.func @transform_7(%arg0: i32) -> (i32, i32) {
    %c0_i32 = arith.constant 0 : i32
    %c0_i32_0 = arith.constant 0 : i32
    return %arg0, %c0_i32 : i32, i32
  }
}

</mosaic_0001>

<bundles_post_ra>
// kernel: tpu_custom_call.1
= control target key start
LH: loop header
LB: loop body
LE: loop exit
PB: predicated region body
PF: predicated region fallthrough
CT: control target
= control target key end

     0   :  { %12 = vsyncpa [#allocation3], 0  ;;  %s1839_s0 = inlined_call_operand.hbm [shape: f32[16,32], index: 0, kind: input, shape index: {}]   ;;  %s1840_s1 = inlined_call_operand.hbm [shape: f32[32,64], index: 1, kind: input, shape index: {}]   ;;  %s1841_s2 = inlined_call_operand.hbm [shape: f32[32,32], index: 2, kind: input, shape index: {}]   ;;  %s1842_s3 = inlined_call_operand.hbm [shape: f32[32,32], index: 3, kind: input, shape index: {}]   ;;  %s1843_s4 = inlined_call_operand.hbm [shape: f32[64,128], index: 4, kind: input, shape index: {}]   ;;  %s1844_s5 = inlined_call_operand.vmem [shape: f32[16,32], index: 5, kind: input, shape index: {}]   ;;  %s1845_s6 = inlined_call_operand.vmem [shape: f32[1,128], index: 6, kind: input, shape index: {}]   ;;  %s1846_s7 = inlined_call_operand.hbm [shape: f32[16,128], index: 7, kind: output, shape index: {}]  }
   0x1   :  { %14 = vsyncpa [#allocation3 + $0x1], 0 }
   0x2   :  { %15 = vsyncpa [#allocation6], 0 }
   0x3   :  { %16 = vsyncpa [#allocation9], 0 }
   0x4   :  { %17 = vsyncpa [#allocation4], 0 }
   0x5   :  { %19 = vsyncpa [#allocation4 + $0x1], 0  ;;  %s1461_s24 = smov 0   ;;  %s1463_s25 = smov 0  }
   0x6   :  { %s1465_s26 = smov 0   ;;  %s1467_s27 = smov 0  }
   0x7 LB: > { %s1408_s28 = smov [#allocation5]   ;;  %s1482_s30 = sadd.s32 4294967295, %s1406_s27   ;;  %s1406_s27 = sphi %s1467_s27, %s1870_s27   ;;  %s1402_s26 = sphi %s1465_s26, %s1869_s26   ;;  %s1398_s25 = sphi %s1463_s25, %s1868_s25   ;;  %s1394_s24 = sphi %s1461_s24, %s1867_s24  }
   0x8   : > { %s220_s29 = sshll.u32 %s1408_s28, 4  ;;  %p958_p0 = scmp.ge.s32.totalorder %s1406_s27, 1  ;;  %s1487_s29 = int_to_ptr.vmem [resolvable:$true] %s220_s29 }
   0x9   : > { %p1847_p1 = scmp.eq.s32.totalorder %s1482_s30, 0  ;;  %p208_p2 = scmp.lt.s32.totalorder %s1406_s27, 3 }
   0xa   : > { %s1409_s9 = smov [#allocation8]   ;;  %s1410_s12 = smov [#allocation7]  }
   0xb   : > { %p1489_p3 = pnand %p958_p0, %p208_p2  ;;  %s246_s10 = sshll.u32 %s1409_s9, 4  ;;  %s1502_s10 = int_to_ptr.vmem [resolvable:$true] %s246_s10 }
   0xc   : > { %s233_s13 = sshll.u32 %s1410_s12, 4  ;;  %s1190_s16 = scalar_lea.hbm %s1840_s1, 512  ;;  %s1504_s13 = int_to_ptr.vmem [resolvable:$true] %s233_s13 }
   0xd   : > { %s1850_s8 = scalar_select %p1489_p3, 1, 0 }
   0xe   : > { %p1108_p5 = pneg %p1489_p3  ;;  %p1191_p7 = scmp.ne.s32.totalorder %s1840_s1, %s1190_s16 }
   0xf   : > { %p1197_p11 = scmp.lt.u32.totalorder %s1190_s16, %s1840_s1 }
  0x10   : > { %p1498_p6 = pnand %p1108_p5, %p1847_p1 }
  0x12   : > { %p1514_p8 = pneg %p1498_p6 }
  0x14   : > { %p1193_p9 = pnand %p1514_p8, %p1191_p7 }
  0x16   : > { %p1194_p10 = pneg %p1193_p9 }
  0x18   : > { %p1199_p12 = pnand %p1197_p11, %p1194_p10 }
  0x1a   : > { %1202 = shalt.err (!%p1199_p12)
}
  0x1b   : > { %s1203_s22 = scalar_lea.vmem %s1487_s29, 512  ;;  %p1211_p5 = scmp.lt.s32.totalorder %s1487_s29, %s1487_s29 }
  0x1c   : > { %p1204_p13 = scmp.ne.s32.totalorder %s1487_s29, %s1203_s22  ;;  %p1212_p4 = scmp.lt.s32.totalorder %s1203_s22, %s1203_s22 }
  0x1e   : > { %p1206_p0 = pnand %p1204_p13, %p1514_p8  ;;  %p1213_p7 = por %p1212_p4, %p1211_p5 }
  0x20   : > { %p1207_p2 = pneg %p1206_p0 }
  0x22   : > { %p1214_p9 = pnand %p1213_p7, %p1207_p2 }
  0x24   : > { %1217 = shalt.err (!%p1214_p9)
}
  0x25   : > { %s1411_s23 = smov 128   ;;  %s1412_s28 = smov 8  }
  0x26   : > { %1111 = dma.hbm_to_vmem [thread:$0]  (!%p1498_p6), %s1840_s1, 512, %s1487_s29, [#allocation6], %s1411_s23, %s1411_s23, %s1412_s28  }
  0x27   : > { %s1218_s16 = scalar_lea.hbm %s1842_s3, 512 }
  0x28   : > { %p1219_p4 = scmp.ne.s32.totalorder %s1842_s3, %s1218_s16  ;;  %p1225_p12 = scmp.lt.u32.totalorder %s1218_s16, %s1842_s3 }
  0x2a   : > { %p1221_p10 = pnand %p1219_p4, %p1514_p8 }
  0x2c   : > { %p1222_p11 = pneg %p1221_p10 }
  0x2e   : > { %p1227_p13 = pnand %p1225_p12, %p1222_p11 }
  0x30   : > { %1230 = shalt.err (!%p1227_p13)
}
  0x31   : > { %s1231_s29 = scalar_lea.vmem %s1502_s10, 512  ;;  %p1239_p7 = scmp.lt.s32.totalorder %s1502_s10, %s1502_s10 }
  0x32   : > { %p1232_p0 = scmp.ne.s32.totalorder %s1502_s10, %s1231_s29  ;;  %p1240_p9 = scmp.lt.s32.totalorder %s1231_s29, %s1231_s29 }
  0x34   : > { %p1234_p2 = pnand %p1232_p0, %p1514_p8  ;;  %p1241_p4 = por %p1240_p9, %p1239_p7 }
  0x36   : > { %p1235_p5 = pneg %p1234_p2 }
  0x38   : > { %p1242_p10 = pnand %p1241_p4, %p1235_p5 }
  0x3a   : > { %1245 = shalt.err (!%p1242_p10)
}
  0x3b   : > { %1117 = dma.hbm_to_vmem [thread:$0]  (!%p1498_p6), %s1842_s3, 512, %s1502_s10, [#allocation9], %s1411_s23, %s1411_s23, %s1412_s28  }
  0x3c   : > { %s1246_s15 = scalar_lea.hbm %s1841_s2, 512 }
  0x3d   : > { %p1247_p11 = scmp.ne.s32.totalorder %s1841_s2, %s1246_s15  ;;  %p1253_p0 = scmp.lt.u32.totalorder %s1246_s15, %s1841_s2 }
  0x3f   : > { %p1249_p12 = pnand %p1247_p11, %p1514_p8 }
  0x41   : > { %p1250_p13 = pneg %p1249_p12 }
  0x43   : > { %p1255_p2 = pnand %p1253_p0, %p1250_p13 }
  0x45   : > { %1258 = shalt.err (!%p1255_p2)
}
  0x46   : > { %s1259_s10 = scalar_lea.vmem %s1504_s13, 512  ;;  %p1267_p4 = scmp.lt.s32.totalorder %s1504_s13, %s1504_s13 }
  0x47   : > { %p1260_p5 = scmp.ne.s32.totalorder %s1504_s13, %s1259_s10  ;;  %p1268_p10 = scmp.lt.s32.totalorder %s1259_s10, %s1259_s10 }
  0x49   : > { %p1262_p7 = pnand %p1260_p5, %p1514_p8  ;;  %p1269_p11 = por %p1268_p10, %p1267_p4 }
  0x4b   : > { %p1263_p9 = pneg %p1262_p7 }
  0x4d   : > { %p1270_p12 = pnand %p1269_p11, %p1263_p9 }
  0x4f   : > { %1273 = shalt.err (!%p1270_p12)
}
  0x50   : > { %1114 = dma.hbm_to_vmem [thread:$0]  (!%p1498_p6), %s1841_s2, 512, %s1504_s13, [#allocation6], %s1411_s23, %s1411_s23, %s1412_s28  }
  0x51   : > { %s1413_s22 = smov [#allocation10]   ;;  %s1274_s15 = scalar_lea.hbm %s1843_s4, 1024 }
  0x52   : > { %s259_s9 = sshll.u32 %s1413_s22, 4  ;;  %p1275_p13 = scmp.ne.s32.totalorder %s1843_s4, %s1274_s15  ;;  %s260_s9 = int_to_ptr.vmem [resolvable:$true] %s259_s9 }
  0x53   : > { %p1281_p5 = scmp.lt.u32.totalorder %s1274_s15, %s1843_s4 }
  0x54   : > { %p1277_p0 = pnand %p1275_p13, %p1514_p8 }
  0x56   : > { %p1278_p2 = pneg %p1277_p0 }
  0x58   : > { %p1283_p7 = pnand %p1281_p5, %p1278_p2 }
  0x5a   : > { %1286 = shalt.err (!%p1283_p7)
}
  0x5b   : > { %s1287_s13 = scalar_lea.vmem %s260_s9, 1024  ;;  %p1295_p11 = scmp.lt.s32.totalorder %s260_s9, %s260_s9 }
  0x5c   : > { %p1288_p9 = scmp.ne.s32.totalorder %s260_s9, %s1287_s13  ;;  %p1296_p12 = scmp.lt.s32.totalorder %s1287_s13, %s1287_s13 }
  0x5e   : > { %p1290_p4 = pnand %p1288_p9, %p1514_p8  ;;  %p1297_p1 = por %p1296_p12, %p1295_p11 }
  0x60   : > { %p1291_p10 = pneg %p1290_p4 }
  0x62   : > { %p1298_p3 = pnand %p1297_p1, %p1291_p10 }
  0x64   : > { %1301 = shalt.err (!%p1298_p3)
}
  0x65   : > { %1120 = dma.hbm_to_vmem [thread:$0]  (!%p1498_p6), %s1843_s4, 1024, %s260_s9, [#allocation9], %s1411_s23, %s1411_s23, %s1412_s28  }
  0x66   : > { %s957_s11 = sadd.s32 4294967294, %s1406_s27   ;;  %s1613_s19 = sadd.s32 1, %s1406_s27  }
  0x67   : > { %s29_s29 = ssub.s32 %s1406_s27, %s1613_s19  ;;  %s32_s22 = sadd.s32 1, %s1402_s26 }
  0x68   : > { %p30_p1 = scmp.eq.s32.totalorder %s29_s29, 0  ;;  %p39_p3 = scmp.ne.s32.totalorder %s1402_s26, %s1398_s25 }
  0x69   : > { %p40_p8 = scmp.eq.s32.totalorder %s1406_s27, 0  ;;  %p45_p13 = scmp.ne.s32.totalorder %s1398_s25, %s1394_s24 }
  0x6a   : > { %s1624_s12 = scalar_select %p30_p1, %s1402_s26, %s32_s22  }
  0x6b   : > { %p1626_p0 = por %p40_p8, %p39_p3  ;;  %p1854_p2 = scmp.eq.s32.totalorder %s1482_s30, 0 }
  0x6c   : > { %p195_p5 = scmp.eq.s32.totalorder %s1482_s30, 1  ;;  %p201_p7 = scmp.eq.s32.totalorder %s957_s11, 1 }
  0x6d   : > { %p1632_p6 = por %p1854_p2, %p45_p13  ;;  %p1133_p9 = scmp.lt.s32.totalorder %s1406_s27, 2 }
  0x6e   : > { %s279_s28 = sand.u32 1, %s1402_s26   ;;  %p1639_p4 = por %p195_p5, %p39_p3 }
  0x6f   : > { %p1643_p10 = por %p201_p7, %p45_p13  ;;  %s964_s16 = sshll.u32 %s279_s28, 3 }
  0x70   : > { %s1856_s9 = scalar_select %p1639_p4, 1, 0 }
  0x71   : > { %s1857_s15 = scalar_select %p1643_p10, 1, 0 }
  0x72   : > { %s965_s17 = sshll.u32 %s1406_s27, 7  ;;  %s283_s10 = scalar_lea.vmem [#allocation2], %s964_s16 }
  0x73   : > { %s1651_s13 = scalar_lea.hbm %s1839_s0, %s965_s17  ;;  %s290_s21 = sshll.u32 %s283_s10, 4  ;;  %s1653_s21 = int_to_ptr.vmem [resolvable:$true] %s290_s21 }
  0x74   : > { %p1657_p11 = pnand %p1133_p9, %p1626_p0  ;;  %s280_s29 = scalar_lea.sflag [#allocation3], %s279_s28 }
  0x75   : > { %s1302_s22 = scalar_lea.hbm %s1651_s13, 128  ;;  %s1307_s18 = scalar_lea.hbm %s1839_s0, 256 }
  0x76   : > { %p1303_p12 = scmp.ne.s32.totalorder %s1651_s13, %s1302_s22  ;;  %p1304_p1 = pneg %p1657_p11 }
  0x77   : > { %p1308_p13 = scmp.lt.u32.totalorder %s1651_s13, %s1839_s0  ;;  %p1309_p0 = scmp.lt.u32.totalorder %s1307_s18, %s1302_s22 }
  0x78   : > { %p1305_p3 = pnand %p1304_p1, %p1303_p12  ;;  %p1311_p5 = scmp.lt.u32.totalorder %s1302_s22, %s1651_s13 }
  0x79   : > { %p1310_p2 = por %p1309_p0, %p1308_p13 }
  0x7a   : > { %p1306_p8 = pneg %p1305_p3 }
  0x7b   : > { %p1312_p7 = por %p1311_p5, %p1310_p2 }
  0x7d   : > { %p1313_p9 = pnand %p1312_p7, %p1306_p8 }
  0x7f   : > { %1316 = shalt.err (!%p1313_p9)
}
  0x80   : > { %s1317_s28 = scalar_lea.vmem %s1653_s21, 128  ;;  %s1414_s10 = smov [#allocation2]  }
  0x81   : > { %p1318_p12 = scmp.ne.s32.totalorder %s1653_s21, %s1317_s28  ;;  %s1322_s16 = sshll.u32 %s1414_s10, 4  ;;  %s1323_s16 = int_to_ptr.vmem [resolvable:$false] %s1322_s16 }
  0x82   : > { %s1324_s17 = scalar_lea.vmem %s1323_s16, 256  ;;  %p1325_p4 = scmp.lt.s32.totalorder %s1653_s21, %s1323_s16 }
  0x83   : > { %p1320_p3 = pnand %p1318_p12, %p1304_p1  ;;  %p1326_p13 = scmp.lt.s32.totalorder %s1324_s17, %s1317_s28 }
  0x85   : > { %p1321_p10 = pneg %p1320_p3  ;;  %p1327_p0 = por %p1326_p13, %p1325_p4 }
  0x87   : > { %p1328_p2 = pnand %p1327_p0, %p1321_p10 }
  0x89   : > { %1331 = shalt.err (!%p1328_p2)
}
  0x8a   : > { %1124 = dma.hbm_to_vmem [thread:$0]  (!%p1657_p11), %s1651_s13, 128, %s1653_s21, %s280_s29  }
  0x8b   : > { %p1859_p8 = scmp.ne.s32.totalorder %s1850_s8, 0 }
  0x8c   : > { %s1689_s22 = sand.u32 (!%p1859_p8), 1, %s1398_s25  }
  0x8d   : > { %299 = sbr.rel (%p1859_p8) target bundleno = 1632 (0x660), region = 48  ;;  %s967_s18 = sshll.u32 (!%p1859_p8), %s1689_s22, 3 }
  0x8e   : > { %s302_s14 = scalar_lea.sflag (!%p1859_p8), [#allocation3], %s1689_s22  ;;  %s305_s20 = scalar_lea.vmem (!%p1859_p8), [#allocation2], %s967_s18 }
  0x94   : > { %1377 = dma.done.wait (%p1632_p6), %s302_s14, 128  }
  0x95   : > { %1379 = vsyncadd (%p1632_p6), %s302_s14, 4294967168  ;;  %p1860_p4 = scmp.eq.s32.totalorder %s1482_s30, 0 }
  0x97   : > { %1381 = dma.done.wait (%p1860_p4), [#allocation6], 1024   ;;  %p1861_p10 = pmov %p1860_p4 }
  0x98   : > { %p1862_p11 = pmov %p1860_p4 }
  0x99   : > { %1383 = vsyncadd (%p1861_p10), [#allocation6], 4294966272 }
  0x9a   : > { %1385 = dma.done.wait (%p1862_p11), [#allocation9], 1536   ;;  %p1863_p1 = pmov %p1860_p4 }
  0x9b   : > { %v1415_v0 = vmov 0.0|0.0   ;;  %vm1416_vm0 = vmmov 0   ;;  %v1417_v1 = vmov 0.0   ;;  %v433_v2 = vlaneseq  ;;  %v353_v5 = vld [vmem:[#allocation5] sm:$0xff]  ;;  %v354_v6 = vld [vmem:[#allocation5 + $0x8] sm:$0xff]  ;;  %v355_v7 = vld [vmem:[#allocation5 + $0x10] sm:$0xff] }
  0x9c   : > { %1387 = vsyncadd (%p1863_p1), [#allocation9], 4294965760  ;;  %1058 = vmatprep.subr.bf16.mxu0 %v1415_v0  ;;  %1014 = vmatprep.mubr.msk.f32.mxu0 %vm1416_vm0, %v1417_v1  ;;  %v1059_v8 = vpack.c.bf16 %v354_v6, %v353_v5  ;;  %v356_v9 = vld [vmem:[#allocation5 + $0x18] sm:$0xff]  ;;  %v1719_v10 = vld [vmem:[%s1844_s5] sm:$0xff]  ;;  %s1418_s13 = smov 32   ;;  %vm357_vm1 = vcmask 261120  }
  0x9d   : > { %1064 = vmatprep.subr.bf16.mxu1 %v1415_v0  ;;  %1025 = vmatprep.mubr.msk.f32.mxu1 %vm1416_vm0, %v1417_v1  ;;  %v1713_v3 = vshrl.u32 %v433_v2, 7  ;;  %v1062_v12 = vpack.c.bf16 %v356_v9, %v355_v7  ;;  %v352_v13 = vld [vmem:[%s305_s20] sm:$0xff]  ;;  %s1419_s21 = smov 96   ;;  %v629_v43 = vld [vmem:[#allocation8] sm:$0xff]  ;;  %v630_v44 = vld [vmem:[#allocation8 + $0x8] sm:$0xff]  ;;  %vm760_vm2 = vcmask 523264  }
  0x9e   : > { %1060 = vmatpush3.bf16.msra.mxu0 %v1059_v8  ;;  %v631_v45 = vld [vmem:[#allocation8 + $0x10] sm:$0xff]  ;;  %v1071_v46 = vpack.c.bf16 %v630_v44, %v629_v43  ;;  %v632_v47 = vld [vmem:[#allocation8 + $0x18] sm:$0xff]  ;;  %v520_v56 = vld [vmem:[#allocation7] sm:$0xff]  ;;  %s979_s16 = sshll.u32 %s1482_s30, 7  ;;  %s351_s17 = scalar_lea.vmem [#allocation11], %s967_s18 }
  0x9f   : > { %v469_v4 = vsub.s32 1, %v1713_v3  ;;  %1061 = vmatprep.subr.bf16.mxu0 %v1415_v0  ;;  %v500_v31 = vsub.s32 3, %v1713_v3  ;;  %v511_v33 = vsub.s32 5, %v1713_v3  ;;  %v435_v39 = vsub.s32 0, %v1713_v3  ;;  %v521_v57 = vld [vmem:[#allocation7 + $0x8] sm:$0xff]  ;;  %v522_v58 = vld [vmem:[#allocation7 + $0x10] sm:$0xff]  ;;  %s1795_s23 = scalar_lea.hbm %s1846_s7, %s979_s16 }
  0xa0   : > { %v1074_v48 = vpack.c.bf16 %v632_v47, %v631_v45  ;;  %v1065_v59 = vpack.c.bf16 %v521_v57, %v520_v56  ;;  %v523_v60 = vld [vmem:[#allocation7 + $0x18] sm:$0xff]  ;;  %s849_s14 = sshll.u32 %s351_s17, 4  ;;  %p1864_p5 = scmp.ne.s32.totalorder %s1856_s9, 0  ;;  %s1797_s14 = int_to_ptr.vmem [resolvable:$true] %s849_s14 }
  0xa1   : > { %v470_v11 = vrot.slane %v1719_v10, %v469_v4  ;;  %v501_v32 = vrot.slane %v1719_v10, %v500_v31  ;;  %v512_v36 = vrot.slane %v1719_v10, %v511_v33  ;;  %v436_v40 = vrot.slane %v1719_v10, %v435_v39  ;;  %v748_v44 = vld [vmem:[#allocation10 + $0x18] sm:$0xff]  ;;  %s1420_s30 = smov [#allocation11]  }
  0xa2   : > { %1063 = vmatpush3.bf16.msra.mxu0 %v1062_v12  ;;  %1066 = vmatpush3.bf16.msra.mxu1 %v1065_v59  ;;  %v1068_v61 = vpack.c.bf16 %v523_v60, %v522_v58  ;;  %v455_v12 = vsub.s32 2, %v1713_v3  ;;  %v432_v59 = vld [vmem:[%s1844_s5 + $0x8] sm:$0xff]  ;;  %s1336_s18 = sshll.u32 %s1420_s30, 4  ;;  %s1337_s18 = int_to_ptr.vmem [resolvable:$false] %s1336_s18 }
  0xa3   : > { %472 = vrot.lane.b32.xlu0 %v470_v11, %s1418_s13  ;;  %1070 = vmatprep.subr.bf16.mxu0 %v1415_v0  ;;  %v729_v60 = vrot.slane %v432_v59, %v469_v4  ;;  %s1338_s11 = scalar_lea.vmem %s1337_s18, 256  ;;  %p1339_p12 = scmp.lt.s32.totalorder %s1797_s14, %s1337_s18 }
  0xa4   : > { %1067 = vmatprep.subr.bf16.mxu1 %v1415_v0 }
  0xa5   : > { %1015 = vmatmul.mubr.msk.f32.vlgmr.msra.gmra.mrb[0].mxu0 %vm357_vm1, %v352_v13  ;;  %v456_v13 = vrot.slane %v1719_v10, %v455_v12 }
  0xa6   : > { %1036 = vmatprep.mubr.msk.f32.mxu0 %vm1416_vm0, %v1417_v1  ;;  %1072 = vmatpush3.bf16.msra.mxu0 %v1071_v46  ;;  %v750_v46 = vld [vmem:[#allocation10 + $0x28] sm:$0xff] }
  0xa7   : > { %1073 = vmatprep.subr.bf16.mxu0 %v1415_v0  ;;  %1069 = vmatpush3.bf16.msra.mxu1 %v1068_v61 }
  0xa8   : > { %1076 = vmatprep.subr.bf16.mxu1 %v1415_v0 }
  0xaa   : > { %1075 = vmatpush3.bf16.msra.mxu0 %v1074_v48  ;;  %v751_v48 = vld [vmem:[#allocation10 + $0x30] sm:$0xff] }
 0x115   : > { %v473_v14 = vpop.permute.xlu0 %472 }
 0x178   : > { %v427_v15 = vpop.f32.mrb[0].mxu0 }
 0x179   : > { %v475_v16 = vadd.f32 %v473_v14, %v427_v15  ;;  %v1016_v17 = vpop.f32.mrb[1].mxu0  ;;  %v437_v41 = vadd.f32 %v436_v40, %v427_v15  ;;  %v462_v14 = vsub.s32 4, %v1713_v3  ;;  %v745_v40 = vld [vmem:[#allocation10] sm:$0xff] }
 0x17b   : > { %477 = vrot.lane.b32.xlu0 %v475_v16, %s1419_s21  ;;  %v484_v18 = vmul.f32 %v475_v16, %v475_v16  ;;  %v438_v42 = vsel %vm357_vm1, %v437_v41, 0.0  ;;  %v443_v54 = vmul.f32 %v437_v41, %v437_v41  ;;  %v463_v17 = vrot.slane %v1719_v10, %v462_v14 }
 0x17d   : > { %486 = vrot.lane.b32.xlu1 %v484_v18, %s1419_s21  ;;  %v444_v55 = vsel %vm357_vm1, %v443_v54, 0.0 }
 0x1ed   : > { %v478_v19 = vpop.permute.xlu0 %477 }
 0x1ee   : > { %v480_v20 = vsel %vm357_vm1, %v478_v19, 0.0 }
 0x1ef   : > { %481 = vadd.xlane.f32.xlu1 %v480_v20  ;;  %v487_v21 = vpop.permute.xlu1 %486 }
 0x1f0   : > { %v489_v22 = vsel %vm357_vm1, %v487_v21, 0.0 }
 0x1f1   : > { %490 = vadd.xlane.f32.xlu0 %v489_v22 }
 0x27c   : > { %v482_v23 = vpop.xlane.xlu1 %481 }
 0x27d   : > { %v483_v24 = vmul.f32 0.03125, %v482_v23  ;;  %v635_v23 = vsub.s32 7, %v1713_v3 }
 0x27e   : > { %v491_v25 = vpop.xlane.xlu0 %490 }
 0x27f   : > { %v493_v26 = vmul.f32 %v483_v24, %v483_v24  ;;  %v492_v27 = vmul.f32 0.03125, %v491_v25 }
 0x281   : > { %v494_v28 = vsub.f32 %v492_v27, %v493_v26 }
 0x283   : > { %v495_v29 = vmax.f32 %v494_v28, 0.0 }
 0x285   : > { %v496_v30 = vadd.f32 1e-05, %v495_v29 }
 0x287   : > { %1182 = vrsqrt.f32 %v496_v30 }
 0x291   : > { %v1183_v34 = vpop.eup %1182 }
 0x292   : > { %v502_v35 = vmul.f32 %v1183_v34, %v501_v32  ;;  %v526_v32 = vsub.s32 6, %v1713_v3 }
 0x294   : > { %504 = vrot.lane.b32.xlu0 %v502_v35, %s1418_s13  ;;  %v508_v37 = vmul.f32 %v502_v35, %v483_v24  ;;  %v636_v24 = vrot.slane %v1719_v10, %v635_v23  ;;  %v527_v33 = vrot.slane %v1719_v10, %v526_v32  ;;  %v749_v10 = vld [vmem:[#allocation10 + $0x20] sm:$0xff] }
 0x295   : > { %v1083_v47 = vpack.c.bf16 %v750_v46, %v749_v10 }
 0x296   : > { %v513_v38 = vsub.f32 %v512_v36, %v508_v37 }
 0x298   : > { %515 = vrot.lane.b32.xlu1 %v513_v38, %s1418_s13 }
 0x2b3   : > { %439 = vadd.xlane.f32.xlu0 %v438_v42  ;;  %v747_v42 = vld [vmem:[#allocation10 + $0x10] sm:$0xff] }
 0x2b4   : > { %v1080_v45 = vpack.c.bf16 %v748_v44, %v747_v42 }
 0x306   : > { %v505_v49 = vpop.permute.xlu0 %504 }
 0x307   : > { %v507_v50 = vmul.f32 %v505_v49, %v475_v16  ;;  %v752_v49 = vld [vmem:[#allocation10 + $0x38] sm:$0xff] }
 0x30a   : > { %v516_v51 = vpop.permute.xlu1 %515 }
 0x30b   : > { %v518_v52 = vadd.f32 %v516_v51, %v507_v50  ;;  %v1086_v50 = vpack.c.bf16 %v752_v49, %v751_v48 }
 0x30d   : > { %v519_v53 = vmax.f32 %v518_v52, 0.0 }
 0x30f   : > { %638 = vrot.lane.b32.xlu1 %v519_v53, %s1419_s21  ;;  %s1332_s21 = scalar_lea.vmem %s1797_s14, 128 }
 0x310   : > { %p1333_p6 = scmp.ne.s32.totalorder %s1797_s14, %s1332_s21  ;;  %p1340_p3 = scmp.lt.s32.totalorder %s1338_s11, %s1332_s21 }
 0x312   : > { %p1334_p7 = pnand %p1333_p6, %p1864_p5  ;;  %p1341_p13 = por %p1340_p3, %p1339_p12 }
 0x314   : > { %p1335_p9 = pneg %p1334_p7 }
 0x316   : > { %p1342_p0 = pnand %p1341_p13, %p1335_p9 }
 0x333   : > { %445 = vadd.xlane.f32.xlu1 %v444_v55 }
 0x340   : > { %v440_v63 = vpop.xlane.xlu0 %439 }
 0x341   : > { %v442_v2 = vmul.f32 0.03125, %v440_v63 }
 0x343   : > { %v448_v6 = vmul.f32 %v442_v2, %v442_v2 }
 0x381   : > { %v639_v62 = vpop.permute.xlu1 %638 }
 0x382   : > { %1037 = vmatmul.mubr.msk.f32.vlgmr.msra.gmra.mrb[2].mxu0 %vm357_vm1, %v639_v62 }
 0x3c0   : > { %v446_v5 = vpop.xlane.xlu1 %445 }
 0x3c1   : > { %v447_v7 = vmul.f32 0.03125, %v446_v5 }
 0x3c3   : > { %v449_v8 = vsub.f32 %v447_v7, %v448_v6 }
 0x3c5   : > { %v450_v9 = vmax.f32 %v449_v8, 0.0 }
 0x3c7   : > { %v451_v11 = vadd.f32 1e-05, %v450_v9 }
 0x3c9   : > { %1184 = vrsqrt.f32 %v451_v11 }
 0x3d3   : > { %v1185_v15 = vpop.eup %1184 }
 0x3d4   : > { %v457_v16 = vmul.f32 %v1185_v15, %v456_v13 }
 0x3d6   : > { %v459_v18 = vmul.f32 %v457_v16, %v442_v2  ;;  %v458_v19 = vmul.f32 %v457_v16, %v437_v41  ;;  %v746_v41 = vld [vmem:[#allocation10 + $0x8] sm:$0xff] }
 0x3d7   : > { %v1077_v43 = vpack.c.bf16 %v746_v41, %v745_v40 }
 0x3d8   : > { %v464_v20 = vsub.f32 %v463_v17, %v459_v18 }
 0x3da   : > { %v465_v21 = vadd.f32 %v464_v20, %v458_v19  ;;  %v625_v19 = vrot.slane %v432_v59, %v455_v12 }
 0x3dc   : > { %v466_v22 = vmax.f32 %v465_v21, 0.0 }
 0x3de   : > { %1026 = vmatmul.mubr.msk.f32.vlgmr.msra.gmra.mrb[0].mxu1 %vm357_vm1, %v466_v22 }
 0x3df   : > { %1055 = vmatprep.mubr.msk.f32.mxu1 %vm1416_vm0, %v1417_v1  ;;  %1078 = vmatpush3.bf16.msra.mxu1 %v1077_v43 }
 0x3e0   : > { %1079 = vmatprep.subr.bf16.mxu1 %v1415_v0 }
 0x3e3   : > { %1081 = vmatpush3.bf16.msra.mxu1 %v1080_v45 }
 0x3e4   : > { %1082 = vmatprep.subr.bf16.mxu1 %v1415_v0 }
 0x3e7   : > { %1084 = vmatpush3.bf16.msra.mxu1 %v1083_v47 }
 0x3e8   : > { %1085 = vmatprep.subr.bf16.mxu1 %v1415_v0  ;;  %v736_v0 = vrot.slane %v432_v59, %v500_v31  ;;  %v618_v31 = vrot.slane %v432_v59, %v435_v39  ;;  %v976_v39 = vld [vmem:[%s1845_s6] ss:$0 sm:$0xff] }
 0x3eb   : > { %1087 = vmatpush3.bf16.msra.mxu1 %v1086_v50 }
 0x455   : > { %v708_v25 = vpop.f32.mrb[2].mxu0 }
 0x456   : > { %v709_v26 = vadd.f32 %v708_v25, %v636_v24  ;;  %v1038_v27 = vpop.f32.mrb[3].mxu0 }
 0x458   : > { %v712_v28 = vsel %vm357_vm1, %v709_v26, 0.0  ;;  %v716_v29 = vmul.f32 %v709_v26, %v709_v26 }
 0x459   : > { %713 = vadd.xlane.f32.xlu0 %v712_v28 }
 0x45a   : > { %v717_v30 = vsel %vm357_vm1, %v716_v29, 0.0 }
 0x45d   : > { %718 = vadd.xlane.f32.xlu0 %v717_v30 }
 0x4b1   : > { %v597_v34 = vpop.f32.mrb[0].mxu1 }
 0x4b2   : > { %v598_v1 = vadd.f32 %v597_v34, %v527_v33  ;;  %v1027_v35 = vpop.f32.mrb[1].mxu1 }
 0x4b4   : > { %v601_v36 = vsel %vm357_vm1, %v598_v1, 0.0  ;;  %v605_v37 = vmul.f32 %v598_v1, %v598_v1 }
 0x4b5   : > { %602 = vadd.xlane.f32.xlu1 %v601_v36 }
 0x4b6   : > { %v606_v38 = vsel %vm357_vm1, %v605_v37, 0.0 }
 0x4b7   : > { %607 = vadd.xlane.f32.xlu0 %v606_v38 }
 0x4e6   : > { %v714_v51 = vpop.xlane.xlu0 %713 }
 0x4e7   : > { %v715_v52 = vmul.f32 0.03125, %v714_v51 }
 0x4e9   : > { %v721_v54 = vmul.f32 %v715_v52, %v715_v52 }
 0x4ea   : > { %v719_v53 = vpop.xlane.xlu0 %718 }
 0x4eb   : > { %v720_v55 = vmul.f32 0.03125, %v719_v53 }
 0x4ed   : > { %v722_v56 = vsub.f32 %v720_v55, %v721_v54 }
 0x4ef   : > { %v723_v57 = vmax.f32 %v722_v56, 0.0 }
 0x4f1   : > { %v724_v58 = vadd.f32 1e-05, %v723_v57 }
 0x4f3   : > { %1186 = vrsqrt.f32 %v724_v58 }
 0x4fd   : > { %v1187_v61 = vpop.eup %1186 }
 0x4fe   : > { %v730_v62 = vmul.f32 %v1187_v61, %v729_v60 }
 0x500   : > { %v732_v63 = vmul.f32 %v730_v62, %v715_v52  ;;  %v731_v2 = vmul.f32 %v730_v62, %v709_v26 }
 0x502   : > { %v737_v5 = vsub.f32 %v736_v0, %v732_v63 }
 0x504   : > { %v738_v6 = vadd.f32 %v737_v5, %v731_v2 }
 0x506   : > { %v739_v7 = vmax.f32 %v738_v6, 0.0 }
 0x508   : > { %741 = vrot.lane.b32.xlu1 %v739_v7, %s1418_s13  ;;  %s836_s13 = scalar_lea.sflag [#allocation4], %s1689_s22 }
 0x542   : > { %v603_v8 = vpop.xlane.xlu1 %602 }
 0x543   : > { %v604_v9 = vmul.f32 0.03125, %v603_v8 }
 0x544   : > { %v608_v11 = vpop.xlane.xlu0 %607 }
 0x545   : > { %v610_v13 = vmul.f32 %v604_v9, %v604_v9  ;;  %v609_v14 = vmul.f32 0.03125, %v608_v11 }
 0x547   : > { %v611_v15 = vsub.f32 %v609_v14, %v610_v13 }
 0x549   : > { %v612_v16 = vmax.f32 %v611_v15, 0.0 }
 0x54b   : > { %v613_v4 = vadd.f32 1e-05, %v612_v16 }
 0x54d   : > { %1188 = vrsqrt.f32 %v613_v4 }
 0x557   : > { %v1189_v17 = vpop.eup %1188 }
 0x558   : > { %v619_v18 = vmul.f32 %v1189_v17, %v618_v31 }
 0x55a   : > { %v621_v20 = vmul.f32 %v619_v18, %v604_v9  ;;  %v620_v22 = vmul.f32 %v619_v18, %v598_v1 }
 0x55c   : > { %v626_v21 = vsub.f32 %v625_v19, %v621_v20 }
 0x55e   : > { %v627_v23 = vadd.f32 %v626_v21, %v620_v22 }
 0x560   : > { %v628_v24 = vmax.f32 %v627_v23, 0.0 }
 0x57a   : > { %v742_v25 = vpop.permute.xlu1 %741 }
 0x57b   : > { %v744_v26 = vsel %vm357_vm1, %v628_v24, %v742_v25 }
 0x57c   : > { %1056 = vmatmul.mubr.msk.f32.vlgmr.msra.gmra.mrb[2].mxu1 %vm760_vm2, %v744_v26 }
 0x64f   : > { %v830_v3 = vpop.f32.mrb[2].mxu1 }
 0x650   : > { %v831_v12 = vadd.f32 %v976_v39, %v830_v3  ;;  %v1057_v27 = vpop.f32.mrb[3].mxu1 }
 0x652   : > { %834 = vst [vmem:[%s351_s17] sm:$0xff] %v831_v12 }
 0x653   : > { %1345 = shalt.err (!%p1342_p0)
}
 0x654   : > { %s1346_s22 = scalar_lea.hbm %s1795_s23, 128  ;;  %s1350_s10 = scalar_lea.hbm %s1846_s7, 256 }
 0x655   : > { %p1347_p2 = scmp.ne.s32.totalorder %s1795_s23, %s1346_s22  ;;  %p1351_p10 = scmp.lt.u32.totalorder %s1795_s23, %s1846_s7 }
 0x656   : > { %p1352_p11 = scmp.lt.u32.totalorder %s1350_s10, %s1346_s22  ;;  %p1354_p6 = scmp.lt.u32.totalorder %s1346_s22, %s1795_s23 }
 0x657   : > { %p1348_p8 = pnand %p1347_p2, %p1864_p5 }
 0x658   : > { %p1353_p1 = por %p1352_p11, %p1351_p10 }
 0x659   : > { %p1349_p4 = pneg %p1348_p8 }
 0x65a   : > { %p1355_p7 = por %p1354_p6, %p1353_p1 }
 0x65c   : > { %p1356_p9 = pnand %p1355_p7, %p1349_p4 }
 0x65e   : > { %1359 = shalt.err (!%p1356_p9)
}
 0x65f   : > { %1106 = dma.vmem_to_hbm [thread:$0]  (%p1864_p5), %s1797_s14, 128, %s1795_s23, %s836_s13  }
 0x660 PF: > { %s861_s20 = sand.u32 1, %s1394_s24   ;;  %p1865_p12 = scmp.ne.s32.totalorder %s1857_s15, 0 }
 0x661   : > { %p1866_p3 = scmp.ge.s32.totalorder %s1406_s27, 2  ;;  %s862_s8 = scalar_lea.sflag [#allocation4], %s861_s20 }
 0x663   : > { %p1126_p13 = pnand %p1866_p3, %p1865_p12 }
 0x665   : > { %1389 = dma.done.wait (!%p1126_p13), %s862_s8, 128  }
 0x666   : > { %1391 = vsyncadd (!%p1126_p13), %s862_s8, 4294967168  ;;  %p22_p0 = scmp.ge.s32.totalorder %s1613_s19, 4   ;;  %s1867_s24 = smov %s1398_s25 }
 0x667   : > { %s1868_s25 = smov %s1402_s26  ;;  %s1869_s26 = smov %s1624_s12 }
 0x668   : > { %s1870_s27 = smov %s1613_s19  ;;  %24 = sbr.rel (!%p22_p0) target bundleno = 7 (0x7), region = 109 }
 0x66f   :  { %867 = vsyncpa [#allocation3], 1 }
 0x670   :  { %869 = vsyncpa [#allocation3 + $0x1], 1 }
 0x671   :  { %870 = vsyncpa [#allocation6], 1 }
 0x672   :  { %871 = vsyncpa [#allocation9], 1 }
 0x673   :  { %872 = vsyncpa [#allocation4], 1 }
 0x674   :  { %874 = vsyncpa [#allocation4 + $0x1], 1 }

</bundles_post_ra>
